<compile_context>
chip_gen: v7x
topology: tpu7x:2x2x1
jax: 0.10.0
libtpu: 0.0.40
codegen_flags: <defaults>
</compile_context>

<pallas_src>
import functools

import jax
import jax.numpy as jnp
from jax.experimental import pallas as pl
from jax.experimental.pallas import tpu as pltpu


def _ffn_kernel(x_ref, w1_ref, b1_ref, w2_ref, b2_ref, o_ref, acc_ref):
    """One (row-tile, hidden-tile) step of y = relu(x @ W1 + b1) @ W2 + b2."""
    k = pl.program_id(1)

    @pl.when(k == 0)
    def _():
        acc_ref[...] = jnp.zeros_like(acc_ref)

    x = x_ref[...].astype(jnp.bfloat16)                       # (tm, C)
    w1 = w1_ref[...].astype(jnp.bfloat16)                     # (C, th)
    h = jnp.dot(x, w1, preferred_element_type=jnp.float32)    # (tm, th) f32 acc
    h = jnp.maximum(h + b1_ref[...], 0.0)                     # bias + ReLU in f32
    w2 = w2_ref[...].astype(jnp.bfloat16)                     # (th, C)
    acc_ref[...] += jnp.dot(h.astype(jnp.bfloat16), w2,
                            preferred_element_type=jnp.float32)

    @pl.when(k == pl.num_programs(1) - 1)
    def _():
        # TODO(synk): training-mode dropout (pltpu.prng_seed + prng_random_bits
        #             mask) omitted; inference (identity) semantics only.
        o_ref[...] = (acc_ref[...] + b2_ref[...]).astype(o_ref.dtype)


def _round_up(n, m):
    return ((n + m - 1) // m) * m


def _choose_tm(M, tm):
    """Row tile: large to amortize per-step overhead, but keep >=2 grid steps
    along M when there is enough work so both v7x TensorCores get shards."""
    tm_eff = min(tm, _round_up(M, 8))
    if M > 128 and pl.cdiv(M, tm_eff) < 2:
        tm_eff = max(128, _round_up(pl.cdiv(M, 2), 128))
    return tm_eff


def _choose_th(H, th):
    """Hidden tile: largest multiple of 128 dividing H that is <= th.  Exact
    divisibility is required - padded hidden columns would otherwise inject
    garbage into the W2 reduction."""
    if H <= th:
        return H
    t = (th // 128) * 128
    while t >= 128:
        if H % t == 0:
            return t
        t -= 128
    return H


def _vmem_limit_bytes():
    # ~96 MiB on 128-MiB chips (v5e/v6e), ~48 MiB on v7x (64 MiB physical).
    try:
        cap = int(pltpu.get_tpu_info().vmem_capacity_bytes)
    except Exception:
        cap = 64 * 1024 * 1024
    return min(int(cap * 0.75), 100 * 1024 * 1024)


@functools.partial(jax.jit, static_argnames=("tm", "th"))
def feed_forward(x, w1, b1, w2, b2, *, tm=512, th=512):
    """x: (B, T, C) -> (B, T, C).  Weights stored (in_features, out_features).

    Weights/biases may be f32 or bf16 (bf16 storage halves weight DMA); the
    matmuls always run bf16 with f32 accumulation.  Dropout is identity
    (inference), matching the PyTorch module under eval().
    """
    B, T, C = x.shape
    H = w1.shape[-1]          # 4 * C
    M = B * T

    x2d = x.reshape(M, C)
    b1_f = b1.reshape(1, H).astype(jnp.float32)
    b2_f = b2.reshape(1, C).astype(jnp.float32)

    tm_eff = _choose_tm(M, tm)
    th_eff = _choose_th(H, th)
    m_tiles = pl.cdiv(M, tm_eff)      # partial last block: writes are masked
    h_tiles = H // th_eff

    cost = pl.CostEstimate(
        flops=4 * M * C * H,
        transcendentals=0,
        bytes_accessed=(M * C * x.dtype.itemsize                 # x read
                        + m_tiles * 2 * C * H * w1.dtype.itemsize  # streamed weights
                        + M * C * x.dtype.itemsize),              # y write
    )

    out2d = pl.pallas_call(
        _ffn_kernel,
        out_shape=jax.ShapeDtypeStruct((M, C), x.dtype),
        grid_spec=pltpu.PrefetchScalarGridSpec(
            num_scalar_prefetch=0,
            grid=(m_tiles, h_tiles),
            in_specs=[
                pl.BlockSpec((tm_eff, C), lambda i, k: (i, 0)),    # x rows (fetched once per i)
                pl.BlockSpec((C, th_eff), lambda i, k: (0, k)),    # W1 column block
                pl.BlockSpec((1, th_eff), lambda i, k: (0, k)),    # b1 block
                pl.BlockSpec((th_eff, C), lambda i, k: (k, 0)),    # W2 row block
                pl.BlockSpec((1, C), lambda i, k: (0, 0)),         # b2 (constant)
            ],
            out_specs=pl.BlockSpec((tm_eff, C), lambda i, k: (i, 0)),
            scratch_shapes=[pltpu.VMEM((tm_eff, C), jnp.float32)],
        ),
        compiler_params=pltpu.CompilerParams(
            dimension_semantics=("parallel", "arbitrary"),
            vmem_limit_bytes=_vmem_limit_bytes(),
        ),
        cost_estimate=cost,
    )(x2d, w1, b1_f, w2, b2_f)

    return out2d.reshape(B, T, C)


def init_params(key, n_embd, dtype=jnp.float32):
    """Deterministic init mimicking torch.nn.Linear (uniform +/- 1/sqrt(fan_in))."""
    hidden = 4 * n_embd
    k1, k2, k3, k4 = jax.random.split(key, 4)
    bound1 = 1.0 / (n_embd ** 0.5)
    bound2 = 1.0 / (hidden ** 0.5)
    w1 = jax.random.uniform(k1, (n_embd, hidden), dtype, -bound1, bound1)
    b1 = jax.random.uniform(k2, (1, hidden), dtype, -bound1, bound1)
    w2 = jax.random.uniform(k3, (hidden, n_embd), dtype, -bound2, bound2)
    b2 = jax.random.uniform(k4, (1, n_embd), dtype, -bound2, bound2)
    return w1, b1, w2, b2


if __name__ == "__main__":
    key = jax.random.PRNGKey(0)
    kx, kp = jax.random.split(key)

    B, T, n_embd = 2, 8, 32   # small shapes consistent with the module
    x = jax.random.normal(kx, (B, T, n_embd), dtype=jnp.float32)
    w1, b1, w2, b2 = init_params(kp, n_embd)

    y = feed_forward(x, w1, b1, w2, b2)
    jax.block_until_ready(y)

    # Reference 1: identical bf16-compute / f32-accumulate recipe (tight check).
    xb = x.reshape(-1, n_embd).astype(jnp.bfloat16)
    h = jnp.dot(xb, w1.astype(jnp.bfloat16),
                preferred_element_type=jnp.float32) + b1
    h = jnp.maximum(h, 0.0)
    ref_bf = (jnp.dot(h.astype(jnp.bfloat16), w2.astype(jnp.bfloat16),
                      preferred_element_type=jnp.float32) + b2
              ).astype(x.dtype).reshape(B, T, n_embd)
    assert jnp.allclose(y, ref_bf, atol=1e-2, rtol=1e-2), "mismatch vs bf16 recipe"

    # Reference 2: pure f32 math (documents bf16 rounding gap vs a PyTorch
    # f32 FeedForward; kernel uses bf16 MXU inputs with f32 accumulation).
    h32 = jnp.maximum(x.reshape(-1, n_embd) @ w1 + b1, 0.0)
    ref_f32 = (h32 @ w2 + b2).reshape(B, T, n_embd)
    assert jnp.allclose(y, ref_f32, atol=2.5e-2, rtol=2.5e-2), "mismatch vs f32 reference"

    print("KERNEL_OK")
</pallas_src>

<mosaic_0001>
module attributes {stable_mosaic.version = 11 : i64} {
  func.func @_ffn_kernel(%arg0: i32, %arg1: i32, %arg2: memref<16x32xf32, #tpu.memory_space<vmem>>, %arg3: memref<32x128xf32, #tpu.memory_space<vmem>>, %arg4: memref<1x128xf32, #tpu.memory_space<vmem>>, %arg5: memref<128x32xf32, #tpu.memory_space<vmem>>, %arg6: memref<1x32xf32, #tpu.memory_space<vmem>>, %arg7: memref<16x32xf32, #tpu.memory_space<vmem>>, %arg8: memref<16x32xf32, #tpu.memory_space<vmem>>) attributes {dimension_semantics = [#tpu.dimension_semantics<parallel>, #tpu.dimension_semantics<arbitrary>], iteration_bounds = array<i64: 1, 1>, scalar_prefetch = 0 : i64, scratch_operands = 1 : i64, tpu.core_type = #tpu.core_type<tc>, window_params = [{transform_indices = @transform_0, window_bounds = array<i64: 16, 32>}, {transform_indices = @transform_1, window_bounds = array<i64: 32, 128>}, {transform_indices = @transform_2, window_bounds = array<i64: 1, 128>}, {transform_indices = @transform_3, window_bounds = array<i64: 128, 32>}, {pipeline_mode = #tpu.pipeline_mode<synchronous>, transform_indices = @transform_4, window_bounds = array<i64: 1, 32>}, {transform_indices = @transform_5, window_bounds = array<i64: 16, 32>}]} {
    %c0_i32 = arith.constant 0 : i32
    %0 = arith.cmpi eq, %arg1, %c0_i32 : i32
    %1 = arith.extui %0 : i1 to i32
    %c0_i32_0 = arith.constant 0 : i32
    %2 = arith.cmpi ne, %1, %c0_i32_0 : i32
    scf.if %2 {
      %cst_16 = arith.constant 0.000000e+00 : f32
      %23 = vector.broadcast %cst_16 : f32 to vector<16x32xf32>
      %c0_17 = arith.constant 0 : index
      %c0_18 = arith.constant 0 : index
      %24 = vector.load %arg8[%c0_17, %c0_18] : memref<16x32xf32, #tpu.memory_space<vmem>>, vector<16x32xf32>
      tpu.vector_store %arg8[%c0_17, %c0_18], %23 {strides = array<i32>} : memref<16x32xf32, #tpu.memory_space<vmem>>, vector<16x32xf32>,
    } else {
    }
    %c0 = arith.constant 0 : index
    %c0_1 = arith.constant 0 : index
    %3 = vector.load %arg2[%c0, %c0_1] : memref<16x32xf32, #tpu.memory_space<vmem>>, vector<16x32xf32>
    %4 = arith.truncf %3 : vector<16x32xf32> to vector<16x32xbf16>
    %c0_2 = arith.constant 0 : index
    %c0_3 = arith.constant 0 : index
    %5 = vector.load %arg3[%c0_2, %c0_3] : memref<32x128xf32, #tpu.memory_space<vmem>>, vector<32x128xf32>
    %6 = arith.truncf %5 : vector<32x128xf32> to vector<32x128xbf16>
    %cst = arith.constant dense<0.000000e+00> : vector<16x128xf32>
    %7 = tpu.matmul %4, %6, %cst {dimension_numbers = #tpu.dot_dimension_numbers<[1], [0], [0], [1], [0, 0, 1, 1], [], []>} : vector<16x32xbf16>, vector<32x128xbf16>, vector<16x128xf32> -> vector<16x128xf32>
    %c0_4 = arith.constant 0 : index
    %c0_5 = arith.constant 0 : index
    %8 = vector.load %arg4[%c0_4, %c0_5] : memref<1x128xf32, #tpu.memory_space<vmem>>, vector<1x128xf32>
    %9 = vector.broadcast %8 : vector<1x128xf32> to vector<16x128xf32>
    %10 = arith.addf %7, %9 : vector<16x128xf32>
    %cst_6 = arith.constant 0.000000e+00 : f32
    %11 = vector.broadcast %cst_6 : f32 to vector<16x128xf32>
    %12 = arith.maximumf %10, %11 : vector<16x128xf32>
    %c0_7 = arith.constant 0 : index
    %c0_8 = arith.constant 0 : index
    %13 = vector.load %arg5[%c0_7, %c0_8] : memref<128x32xf32, #tpu.memory_space<vmem>>, vector<128x32xf32>
    %14 = arith.truncf %13 : vector<128x32xf32> to vector<128x32xbf16>
    %c0_9 = arith.constant 0 : index
    %c0_10 = arith.constant 0 : index
    %15 = vector.load %arg8[%c0_9, %c0_10] : memref<16x32xf32, #tpu.memory_space<vmem>>, vector<16x32xf32>
    %16 = arith.truncf %12 : vector<16x128xf32> to vector<16x128xbf16>
    %cst_11 = arith.constant dense<0.000000e+00> : vector<16x32xf32>
    %17 = tpu.matmul %16, %14, %cst_11 {dimension_numbers = #tpu.dot_dimension_numbers<[1], [0], [0], [1], [0, 0, 1, 1], [], []>} : vector<16x128xbf16>, vector<128x32xbf16>, vector<16x32xf32> -> vector<16x32xf32>
    %18 = arith.addf %15, %17 : vector<16x32xf32>
    %c0_12 = arith.constant 0 : index
    %c0_13 = arith.constant 0 : index
    %19 = vector.load %arg8[%c0_12, %c0_13] : memref<16x32xf32, #tpu.memory_space<vmem>>, vector<16x32xf32>
    tpu.vector_store %arg8[%c0_12, %c0_13], %18 {strides = array<i32>} : memref<16x32xf32, #tpu.memory_space<vmem>>, vector<16x32xf32>,
    %c0_i32_14 = arith.constant 0 : i32
    %20 = arith.cmpi eq, %arg1, %c0_i32_14 : i32
    %21 = arith.extui %20 : i1 to i32
    %c0_i32_15 = arith.constant 0 : i32
    %22 = arith.cmpi ne, %21, %c0_i32_15 : i32
    scf.if %22 {
      %c0_16 = arith.constant 0 : index
      %c0_17 = arith.constant 0 : index
      %23 = vector.load %arg8[%c0_16, %c0_17] : memref<16x32xf32, #tpu.memory_space<vmem>>, vector<16x32xf32>
      %c0_18 = arith.constant 0 : index
      %c0_19 = arith.constant 0 : index
      %24 = vector.load %arg6[%c0_18, %c0_19] : memref<1x32xf32, #tpu.memory_space<vmem>>, vector<1x32xf32>
      %25 = vector.broadcast %24 : vector<1x32xf32> to vector<16x32xf32>
      %26 = arith.addf %23, %25 : vector<16x32xf32>
      %c0_20 = arith.constant 0 : index
      %c0_21 = arith.constant 0 : index
      %27 = vector.load %arg7[%c0_20, %c0_21] : memref<16x32xf32, #tpu.memory_space<vmem>>, vector<16x32xf32>
      tpu.vector_store %arg7[%c0_20, %c0_21], %26 {strides = array<i32>} : memref<16x32xf32, #tpu.memory_space<vmem>>, vector<16x32xf32>,
    } else {
    }
    return
  }
  func.func @transform_0(%arg0: i32, %arg1: i32) -> (i32, i32) {
    %c0_i32 = arith.constant 0 : i32
    %c0_i32_0 = arith.constant 0 : i32
    return %arg0, %c0_i32 : i32, i32
  }
  func.func @transform_1(%arg0: i32, %arg1: i32) -> (i32, i32) {
    %c0_i32 = arith.constant 0 : i32
    %c0_i32_0 = arith.constant 0 : i32
    return %c0_i32, %arg1 : i32, i32
  }
  func.func @transform_2(%arg0: i32, %arg1: i32) -> (i32, i32) {
    %c0_i32 = arith.constant 0 : i32
    %c0_i32_0 = arith.constant 0 : i32
    return %c0_i32, %arg1 : i32, i32
  }
  func.func @transform_3(%arg0: i32, %arg1: i32) -> (i32, i32) {
    %c0_i32 = arith.constant 0 : i32
    %c0_i32_0 = arith.constant 0 : i32
    return %arg1, %c0_i32 : i32, i32
  }
  func.func @transform_4(%arg0: i32, %arg1: i32) -> (i32, i32) {
    %c0_i32 = arith.constant 0 : i32
    %c0_i32_0 = arith.constant 0 : i32
    %c0_i32_1 = arith.constant 0 : i32
    return %c0_i32, %c0_i32_0 : i32, i32
  }
  func.func @transform_5(%arg0: i32, %arg1: i32) -> (i32, i32) {
    %c0_i32 = arith.constant 0 : i32
    %c0_i32_0 = arith.constant 0 : i32
    return %arg0, %c0_i32 : i32, i32
  }
}

</mosaic_0001>

<bundles_post_ra>
// kernel: feed_forward.1
= control target key start
LH: loop header
LB: loop body
LE: loop exit
PB: predicated region body
PF: predicated region fallthrough
CT: control target
= control target key end

     0   :  { %vm26_vm0 = vcmask 261120   ;;  %v268_v3 = vmov 0.0   ;;  %vm269_vm1 = vmmov 0   ;;  %s394_s0 = inlined_call_operand.vmem [shape: f32[16,32], index: 0, kind: input, shape index: {}]   ;;  %s395_s1 = inlined_call_operand.vmem [shape: f32[32,128], index: 1, kind: input, shape index: {}]   ;;  %s396_s2 = inlined_call_operand.vmem [shape: f32[1,128], index: 2, kind: input, shape index: {}]   ;;  %s397_s3 = inlined_call_operand.vmem [shape: f32[128,32], index: 3, kind: input, shape index: {}]   ;;  %s398_s4 = inlined_call_operand.vmem [shape: f32[1,32], index: 4, kind: input, shape index: {}]   ;;  %s399_s5 = inlined_call_operand.hbm [shape: f32[16,32], index: 5, kind: output, shape index: {}]  }
   0x1   :  { %v32_v0 = vld [vmem:[%s395_s1] sm:$0xff]  ;;  %v33_v1 = vld [vmem:[%s395_s1 + $0x8] sm:$0xff]  ;;  %v34_v2 = vld [vmem:[%s395_s1 + $0x10] sm:$0xff]  ;;  %211 = vmatprep.subr.bf16.mxu0 %v268_v3  ;;  %215 = vmatprep.mubr.msk.bf16.mxu0 %vm269_vm1, %v268_v3  ;;  %27 = vst.msk [vmem:[#allocation2] sm:$0xff] %vm26_vm0, %v268_v3 }
   0x2   :  { %v36_v4 = vpack.c.bf16 %v33_v1, %v32_v0  ;;  %v35_v5 = vld [vmem:[%s395_s1 + $0x18] sm:$0xff]  ;;  %28 = vst.msk [vmem:[#allocation2 + $0x8] sm:$0xff] %vm26_vm0, %v268_v3  ;;  %219 = vmatprep.subr.bf16.mxu1 %v268_v3  ;;  %v92_v6 = vld [vmem:[%s397_s3] sm:$0xff]  ;;  %v93_v7 = vld [vmem:[%s397_s3 + $0x8] sm:$0xff]  ;;  %235 = vmatprep.mubr.msk.bf16.mxu1 %vm269_vm1, %v268_v3 }
   0x3   :  { %v94_v8 = vld [vmem:[%s397_s3 + $0x10] sm:$0xff]  ;;  %v37_v9 = vpack.c.bf16 %v35_v5, %v34_v2  ;;  %v29_v10 = vld [vmem:[%s394_s0] sm:$0xff]  ;;  %v30_v11 = vld [vmem:[%s394_s0 + $0x8] sm:$0xff]  ;;  %v108_v12 = vpack.c.bf16 %v93_v7, %v92_v6 }
   0x4   :  { %212 = vmatpush3.bf16.msra.mxu0 %v36_v4  ;;  %v95_v13 = vld [vmem:[%s397_s3 + $0x18] sm:$0xff]  ;;  %v31_v15 = vpack.c.bf16 %v30_v11, %v29_v10  ;;  %v96_v16 = vld [vmem:[%s397_s3 + $0x20] sm:$0xff]  ;;  %v97_v17 = vld [vmem:[%s397_s3 + $0x28] sm:$0xff] }
   0x5   :  { %213 = vmatprep.subr.bf16.mxu0 %v268_v3  ;;  %220 = vmatpush3.bf16.msra.mxu1 %v108_v12  ;;  %v109_v14 = vpack.c.bf16 %v95_v13, %v94_v8 }
   0x6   :  { %221 = vmatprep.subr.bf16.mxu1 %v268_v3 }
   0x7   :  { %10 = vsyncpa [#allocation4], 0  ;;  %v110_v18 = vpack.c.bf16 %v97_v17, %v96_v16  ;;  %v98_v19 = vld [vmem:[%s397_s3 + $0x30] sm:$0xff]  ;;  %v99_v20 = vld [vmem:[%s397_s3 + $0x38] sm:$0xff]  ;;  %s270_s11 = smov [#allocation3]  }
   0x8   :  { %214 = vmatpush3.bf16.msra.mxu0 %v37_v9  ;;  %v111_v21 = vpack.c.bf16 %v99_v20, %v98_v19  ;;  %v100_v22 = vld [vmem:[%s397_s3 + $0x40] sm:$0xff]  ;;  %v101_v23 = vld [vmem:[%s397_s3 + $0x48] sm:$0xff]  ;;  %v102_v25 = vld [vmem:[%s397_s3 + $0x50] sm:$0xff]  ;;  %s185_s12 = sshll.u32 %s270_s11, 4  ;;  %s186_s12 = int_to_ptr.vmem [resolvable:$true] %s185_s12 }
   0x9   :  { %222 = vmatpush3.bf16.msra.mxu1 %v109_v14  ;;  %v112_v24 = vpack.c.bf16 %v101_v23, %v100_v22  ;;  %v103_v26 = vld [vmem:[%s397_s3 + $0x58] sm:$0xff]  ;;  %v104_v28 = vld [vmem:[%s397_s3 + $0x60] sm:$0xff]  ;;  %v105_v29 = vld [vmem:[%s397_s3 + $0x68] sm:$0xff]  ;;  %s244_s13 = scalar_lea.vmem %s186_s12, 256  ;;  %p249_p1 = scmp.lt.s32.totalorder %s186_s12, %s186_s12 }
   0xa   :  { %223 = vmatprep.subr.bf16.mxu1 %v268_v3  ;;  %v113_v27 = vpack.c.bf16 %v103_v26, %v102_v25  ;;  %v114_v30 = vpack.c.bf16 %v105_v29, %v104_v28  ;;  %v106_v31 = vld [vmem:[%s397_s3 + $0x70] sm:$0xff]  ;;  %v107_v32 = vld [vmem:[%s397_s3 + $0x78] sm:$0xff]  ;;  %v196_v34 = vld [vmem:[%s396_s2] ss:$0 sm:$0xff]  ;;  %p245_p0 = scmp.ne.s32.totalorder %s186_s12, %s244_s13  ;;  %p250_p2 = scmp.lt.s32.totalorder %s244_s13, %s244_s13 }
   0xb   :  { %216 = vmatmul.mubr.msk.bf16.vlgmr.msra.gmra.mrb[0].mxu0 %vm26_vm0, %v31_v15  ;;  %v115_v33 = vpack.c.bf16 %v107_v32, %v106_v31  ;;  %v116_v44 = vld [vmem:[#allocation2] sm:$0xff]  ;;  %v117_v46 = vld [vmem:[#allocation2 + $0x8] sm:$0xff] }
   0xc   :  { %v198_v52 = vld [vmem:[%s398_s4] ss:$0 sm:$0xff]  ;;  %p251_p3 = por %p250_p2, %p249_p1 }
   0xd   :  { %224 = vmatpush3.bf16.msra.mxu1 %v110_v18 }
   0xe   :  { %225 = vmatprep.subr.bf16.mxu1 %v268_v3  ;;  %p252_p4 = pnand %p251_p3, %p245_p0 }
  0x11   :  { %226 = vmatpush3.bf16.msra.mxu1 %v111_v21 }
  0x12   :  { %227 = vmatprep.subr.bf16.mxu1 %v268_v3 }
  0x15   :  { %228 = vmatpush3.bf16.msra.mxu1 %v112_v24 }
  0x16   :  { %229 = vmatprep.subr.bf16.mxu1 %v268_v3 }
  0x19   :  { %230 = vmatpush3.bf16.msra.mxu1 %v113_v27 }
  0x1a   :  { %231 = vmatprep.subr.bf16.mxu1 %v268_v3 }
  0x1d   :  { %232 = vmatpush3.bf16.msra.mxu1 %v114_v30 }
  0x1e   :  { %233 = vmatprep.subr.bf16.mxu1 %v268_v3 }
  0x21   :  { %234 = vmatpush3.bf16.msra.mxu1 %v115_v33 }
  0xde   :  { %v83_v35 = vpop.f32.mrb[0].mxu0 }
  0xdf   :  { %v84_v36 = vadd.f32 %v196_v34, %v83_v35  ;;  %v217_v37 = vpop.f32.mrb[1].mxu0 }
  0xe0   :  { %v86_v38 = vpop.f32.mrb[2].mxu0 }
  0xe1   :  { %v87_v39 = vadd.f32 %v196_v34, %v86_v38  ;;  %v218_v40 = vpop.f32.mrb[3].mxu0  ;;  %v90_v41 = vmax.f32 %v84_v36, 0.0 }
  0xe3   :  { %v91_v42 = vmax.f32 %v87_v39, 0.0 }
  0xe5   :  { %v118_v43 = vpack.c.bf16 %v91_v42, %v90_v41 }
  0xe7   :  { %236 = vmatmul.mubr.bf16.vlgmr.msra.gmra.mrb[0].mxu1 %v118_v43 }
 0x1ba   :  { %v153_v45 = vpop.f32.mrb[0].mxu1 }
 0x1bb   :  { %v160_v47 = vadd.f32 %v153_v45, %v116_v44  ;;  %v237_v48 = vpop.f32.mrb[1].mxu1 }
 0x1bc   :  { %v156_v49 = vpop.f32.mrb[2].mxu1 }
 0x1bd   :  { %162 = vst.msk [vmem:[#allocation2] sm:$0xff] %vm26_vm0, %v160_v47  ;;  %v161_v50 = vadd.f32 %v156_v49, %v117_v46  ;;  %v238_v51 = vpop.f32.mrb[3].mxu1 }
 0x1bf   :  { %163 = vst.msk [vmem:[#allocation2 + $0x8] sm:$0xff] %vm26_vm0, %v161_v50 }
 0x1c4   :  { %v167_v53 = vld [vmem:[#allocation2] sm:$0xff] }
 0x1c5   :  { %v176_v54 = vadd.f32 %v198_v52, %v167_v53 }
 0x1c6   :  { %v168_v55 = vld [vmem:[#allocation2 + $0x8] sm:$0xff] }
 0x1c7   :  { %v177_v56 = vadd.f32 %v198_v52, %v168_v55  ;;  %178 = vst.msk [vmem:[#allocation3] sm:$0xff] %vm26_vm0, %v176_v54 }
 0x1c9   :  { %179 = vst.msk [vmem:[#allocation3 + $0x8] sm:$0xff] %vm26_vm0, %v177_v56 }
 0x1ca   :  { %255 = shalt.err (!%p252_p4)
}
 0x1cb   :  { %s256_s15 = scalar_lea.hbm %s399_s5, 256 }
 0x1cc   :  { %p257_p5 = scmp.ne.s32.totalorder %s399_s5, %s256_s15  ;;  %p260_p6 = scmp.lt.u32.totalorder %s256_s15, %s399_s5 }
 0x1ce   :  { %p262_p7 = pnand %p260_p6, %p257_p5 }
 0x1d0   :  { %265 = shalt.err (!%p262_p7)
}
 0x1d1   :  { %s271_s19 = smov 128   ;;  %s272_s20 = smov 8  }
 0x1d2   :  { %191 = dma.vmem_to_hbm [thread:$0]  %s186_s12, 256, %s399_s5, [#allocation4], %s271_s19, %s271_s19, %s272_s20  }
 0x1d3   :  { %266 = dma.done.wait [#allocation4], 256  }
 0x1d4   :  { %267 = vsyncadd [#allocation4], 4294967040 }
 0x1d5   :  { %195 = vsyncpa [#allocation4], 1 }

</bundles_post_ra>
